<compile_context>
chip_gen: v6e
topology: v6e:2x2x1
jax: 0.10.0
libtpu: 0.0.40
codegen_flags: <defaults>
</compile_context>

<pallas_src>
import jax
import jax.numpy as jnp
from jax.experimental import pallas as pl
from jax.experimental.pallas import tpu as pltpu


def _round_up(x: int, m: int) -> int:
    return ((x + m - 1) // m) * m


def critic_kernel(x_ref, w1_ref, b1_ref, w2_ref, b2_ref, wq_ref, bq_ref, q_ref):
    # x_ref : (TB, Dsa)  packed [state | action], matmul dtype (bf16)
    # w1    : (Dsa, F1p) bf16     b1: (1, F1p) f32
    # w2    : (F1p, F2p) bf16     b2: (1, F2p) f32
    # wq    : (1, F2p)   f32      bq: (1, 1)   f32
    # q_ref : (TB, 1)    f32
    cdt = w1_ref.dtype  # matmul operand dtype

    # fc1: single MXU pass over the packed (state|action) operand.
    h1 = (jnp.dot(x_ref[...].astype(cdt), w1_ref[...],
                  preferred_element_type=jnp.float32) + b1_ref[...])
    h1 = jnp.maximum(h1, 0.0)                                   # ReLU (f32, VPU)

    # fc2: second (and last) MXU pass.
    h2 = (jnp.dot(h1.astype(cdt), w2_ref[...],
                  preferred_element_type=jnp.float32) + b2_ref[...])
    h2 = jnp.maximum(h2, 0.0)                                   # ReLU (f32, VPU)

    # Final (F2 -> 1) layer: broadcast-multiply + lane reduce on VPU/XLU
    # (an N=1 MXU matmul would waste a whole, fully-masked MXU pass).
    q = jnp.sum(h2 * wq_ref[...], axis=-1, keepdims=True) + bq_ref[...]
    q_ref[...] = q.astype(q_ref.dtype)


def critic_forward(state, action, prepared_params, *, block_b=1024, target_steps=4):
    """Pallas wrapper: batch-tiled, weight-resident MLP forward. Returns (B, 1) f32."""
    w1, b1, w2, b2, wq_row, bq = prepared_params
    B = state.shape[0]
    F1p, F2p = w1.shape[1], w2.shape[1]
    cdt = w1.dtype

    # Pack [state | action] once in XLA, directly in the matmul dtype: fc1
    # becomes a single MXU pass and input DMA bytes are halved for f32 callers
    # (the cast-to-bf16 happens anyway before the MXU, so numerics are
    # unchanged vs casting inside the kernel).
    x = jnp.concatenate([state, action], axis=1).astype(cdt)
    Dsa = x.shape[1]

    # Batch tile: multiple of 8 sublanes, sized so the grid has ~target_steps
    # steps (>= 2 whenever B > 8) -> v7x's two TensorCores both get work and
    # the activation DMA overlaps compute, while tail padding stays under one
    # tile.  Capped at block_b for very large batches.
    TB = min(block_b, max(8, _round_up(pl.cdiv(B, target_steps), 8)))
    B_pad = _round_up(B, TB)
    if B_pad != B:
        x = jnp.pad(x, ((0, B_pad - B), (0, 0)))
    grid = (B_pad // TB,)

    batch_spec = pl.BlockSpec((TB, Dsa), lambda i: (i, 0))
    resident = lambda arr: pl.BlockSpec(arr.shape, lambda i: (0, 0))

    # VMEM budget: double-buffered activation/output tiles + resident params
    # (constant-index blocks counted once) + f32 temporaries, plus headroom.
    act_bytes = 2 * TB * Dsa * x.dtype.itemsize
    out_bytes = 2 * TB * 4
    par_bytes = sum(int(p.size) * p.dtype.itemsize for p in prepared_params)
    tmp_bytes = TB * (F1p + F2p) * 4 + TB * max(F1p, F2p) * (4 + 2)
    vmem_bytes = int(min(max(act_bytes + out_bytes + par_bytes + tmp_bytes
                             + (4 << 20), 8 << 20), 32 << 20))

    q = pl.pallas_call(
        critic_kernel,
        out_shape=jax.ShapeDtypeStruct((B_pad, 1), jnp.float32),
        grid=grid,
        in_specs=[batch_spec,
                  resident(w1), resident(b1),
                  resident(w2), resident(b2),
                  resident(wq_row), resident(bq)],
        out_specs=pl.BlockSpec((TB, 1), lambda i: (i, 0)),
        compiler_params=pltpu.CompilerParams(
            dimension_semantics=("parallel",),    # v7x: shard batch over 2 TCs
            vmem_limit_bytes=vmem_bytes),
    )(x, w1, b1, w2, b2, wq_row, bq)
    return q[:B]


def init_params(key, input_dims, num_actions, fc1_dim, fc2_dim):
    """Deterministic synthetic parameters (PyTorch-Linear-like uniform init),
    stored as (in, out) so the kernel does x @ W + b."""
    d_in = input_dims + num_actions
    ks = jax.random.split(key, 6)

    def lin(kw, kb, fan_in, fan_out):
        bound = 1.0 / jnp.sqrt(float(fan_in))
        w = jax.random.uniform(kw, (fan_in, fan_out), jnp.float32, -bound, bound)
        b = jax.random.uniform(kb, (1, fan_out), jnp.float32, -bound, bound)
        return w, b

    w1, b1 = lin(ks[0], ks[1], d_in, fc1_dim)
    w2, b2 = lin(ks[2], ks[3], fc1_dim, fc2_dim)
    wq, bq = lin(ks[4], ks[5], fc2_dim, 1)
    return (w1, b1, w2, b2, wq, bq)


def prepare_params(params, *, weight_dtype=jnp.bfloat16):
    """Zero-pad hidden dims to multiples of 128 (full lanes) and cast matmul
    weights to `weight_dtype`.  Biases and the final reduce vector stay f32
    (elementwise math is f32 on every chip generation).  Padded weight/bias
    lanes are zero, so they contribute exactly 0 through both ReLUs and the
    final reduce."""
    w1, b1, w2, b2, wq, bq = params
    F1, F2 = w1.shape[1], w2.shape[1]
    F1p, F2p = _round_up(F1, 128), _round_up(F2, 128)

    w1p = jnp.pad(w1, ((0, 0), (0, F1p - F1)))          # (Ds+Da, F1p), stacked
    b1p = jnp.pad(b1, ((0, 0), (0, F1p - F1)))
    w2p = jnp.pad(w2, ((0, F1p - F1), (0, F2p - F2)))
    b2p = jnp.pad(b2, ((0, 0), (0, F2p - F2)))
    wq_row = jnp.pad(wq.reshape(1, F2), ((0, 0), (0, F2p - F2)))

    return (w1p.astype(weight_dtype), b1p.astype(jnp.float32),
            w2p.astype(weight_dtype), b2p.astype(jnp.float32),
            wq_row.astype(jnp.float32), bq.astype(jnp.float32))


def reference_forward(state, action, prepared_params):
    """Pure-JAX mirror of the kernel math (same packing/padding/dtypes)."""
    w1, b1, w2, b2, wq_row, bq = prepared_params
    cdt = w1.dtype
    f32 = jnp.float32
    x = jnp.concatenate([state, action], axis=1).astype(cdt)
    h1 = jnp.maximum(jnp.dot(x, w1, preferred_element_type=f32) + b1, 0.0)
    h2 = jnp.maximum(jnp.dot(h1.astype(cdt), w2, preferred_element_type=f32) + b2, 0.0)
    return jnp.sum(h2 * wq_row, axis=-1, keepdims=True) + bq


def reference_forward_f32(state, action, params):
    """Full-f32 PyTorch-equivalent forward (unpadded params)."""
    w1, b1, w2, b2, wq, bq = params
    x = jnp.concatenate([state, action], axis=1)
    h1 = jnp.maximum(x @ w1 + b1, 0.0)
    h2 = jnp.maximum(h1 @ w2 + b2, 0.0)
    return h2 @ wq + bq


if __name__ == "__main__":
    # Small shapes consistent with the module's forward:
    #   state: (B, input_dims), action: (B, num_actions), Q: (B, 1)
    B, input_dims, num_actions = 12, 16, 4
    fc1_dim, fc2_dim = 32, 32

    key = jax.random.PRNGKey(0)
    k_s, k_a, k_p = jax.random.split(key, 3)
    state = jax.random.normal(k_s, (B, input_dims), jnp.float32)
    action = jax.random.normal(k_a, (B, num_actions), jnp.float32)

    params = init_params(k_p, input_dims, num_actions, fc1_dim, fc2_dim)
    prepared = prepare_params(params)            # bf16 weights, 128-padded

    q = critic_forward(state, action, prepared)  # grid has 2 steps even at B=12
    q = jax.block_until_ready(q)

    q_ref = reference_forward(state, action, prepared)
    q_f32 = reference_forward_f32(state, action, params)

    assert q.shape == (B, 1)
    # Exact-math mirror (same bf16 operands, f32 accumulation).
    assert jnp.allclose(q, q_ref, atol=1e-4, rtol=1e-4)
    # Full-precision PyTorch-equivalent reference; bf16 weight/activation
    # quantization is the only difference, so a loose tolerance suffices.
    assert jnp.allclose(q, q_f32, atol=5e-2, rtol=5e-2)

    print("KERNEL_OK")
</pallas_src>

<mosaic_0001>
module attributes {stable_mosaic.version = 11 : i64} {
  func.func @critic_kernel(%arg0: i32, %arg1: memref<8x20xbf16, #tpu.memory_space<vmem>>, %arg2: memref<20x128xbf16, #tpu.memory_space<vmem>>, %arg3: memref<1x128xf32, #tpu.memory_space<vmem>>, %arg4: memref<128x128xbf16, #tpu.memory_space<vmem>>, %arg5: memref<1x128xf32, #tpu.memory_space<vmem>>, %arg6: memref<1x128xf32, #tpu.memory_space<vmem>>, %arg7: memref<1x1xf32, #tpu.memory_space<vmem>>, %arg8: memref<8x1xf32, #tpu.memory_space<vmem>>) attributes {dimension_semantics = [#tpu.dimension_semantics<parallel>], iteration_bounds = array<i64: 2>, scalar_prefetch = 0 : i64, scratch_operands = 0 : i64, tpu.core_type = #tpu.core_type<tc>, window_params = [{transform_indices = @transform_0, window_bounds = array<i64: 8, 20>}, {pipeline_mode = #tpu.pipeline_mode<synchronous>, transform_indices = @transform_1, window_bounds = array<i64: 20, 128>}, {pipeline_mode = #tpu.pipeline_mode<synchronous>, transform_indices = @transform_2, window_bounds = array<i64: 1, 128>}, {pipeline_mode = #tpu.pipeline_mode<synchronous>, transform_indices = @transform_3, window_bounds = array<i64: 128, 128>}, {pipeline_mode = #tpu.pipeline_mode<synchronous>, transform_indices = @transform_4, window_bounds = array<i64: 1, 128>}, {pipeline_mode = #tpu.pipeline_mode<synchronous>, transform_indices = @transform_5, window_bounds = array<i64: 1, 128>}, {pipeline_mode = #tpu.pipeline_mode<synchronous>, transform_indices = @transform_6, window_bounds = array<i64: 1, 1>}, {transform_indices = @transform_7, window_bounds = array<i64: 8, 1>}]} {
    %c0 = arith.constant 0 : index
    %c0_0 = arith.constant 0 : index
    %0 = vector.load %arg1[%c0, %c0_0] : memref<8x20xbf16, #tpu.memory_space<vmem>>, vector<8x20xbf16>
    %c0_1 = arith.constant 0 : index
    %c0_2 = arith.constant 0 : index
    %1 = vector.load %arg2[%c0_1, %c0_2] : memref<20x128xbf16, #tpu.memory_space<vmem>>, vector<20x128xbf16>
    %cst = arith.constant dense<0.000000e+00> : vector<8x128xf32>
    %2 = tpu.matmul %0, %1, %cst {dimension_numbers = #tpu.dot_dimension_numbers<[1], [0], [0], [1], [0, 0, 1, 1], [], []>} : vector<8x20xbf16>, vector<20x128xbf16>, vector<8x128xf32> -> vector<8x128xf32>
    %c0_3 = arith.constant 0 : index
    %c0_4 = arith.constant 0 : index
    %3 = vector.load %arg3[%c0_3, %c0_4] : memref<1x128xf32, #tpu.memory_space<vmem>>, vector<1x128xf32>
    %4 = vector.broadcast %3 : vector<1x128xf32> to vector<8x128xf32>
    %5 = arith.addf %2, %4 : vector<8x128xf32>
    %cst_5 = arith.constant 0.000000e+00 : f32
    %6 = vector.broadcast %cst_5 : f32 to vector<8x128xf32>
    %7 = arith.maximumf %5, %6 : vector<8x128xf32>
    %8 = arith.truncf %7 : vector<8x128xf32> to vector<8x128xbf16>
    %c0_6 = arith.constant 0 : index
    %c0_7 = arith.constant 0 : index
    %9 = vector.load %arg4[%c0_6, %c0_7] : memref<128x128xbf16, #tpu.memory_space<vmem>>, vector<128x128xbf16>
    %cst_8 = arith.constant dense<0.000000e+00> : vector<8x128xf32>
    %10 = tpu.matmul %8, %9, %cst_8 {dimension_numbers = #tpu.dot_dimension_numbers<[1], [0], [0], [1], [0, 0, 1, 1], [], []>} : vector<8x128xbf16>, vector<128x128xbf16>, vector<8x128xf32> -> vector<8x128xf32>
    %c0_9 = arith.constant 0 : index
    %c0_10 = arith.constant 0 : index
    %11 = vector.load %arg5[%c0_9, %c0_10] : memref<1x128xf32, #tpu.memory_space<vmem>>, vector<1x128xf32>
    %12 = vector.broadcast %11 : vector<1x128xf32> to vector<8x128xf32>
    %13 = arith.addf %10, %12 : vector<8x128xf32>
    %cst_11 = arith.constant 0.000000e+00 : f32
    %14 = vector.broadcast %cst_11 : f32 to vector<8x128xf32>
    %15 = arith.maximumf %13, %14 : vector<8x128xf32>
    %c0_12 = arith.constant 0 : index
    %c0_13 = arith.constant 0 : index
    %16 = vector.load %arg6[%c0_12, %c0_13] : memref<1x128xf32, #tpu.memory_space<vmem>>, vector<1x128xf32>
    %17 = vector.broadcast %16 : vector<1x128xf32> to vector<8x128xf32>
    %18 = arith.mulf %15, %17 : vector<8x128xf32>
    %cst_14 = arith.constant dense<0.000000e+00> : vector<8xf32>
    %19 = vector.multi_reduction <add>, %18, %cst_14 [1] : vector<8x128xf32> to vector<8xf32>
    %20 = vector.shape_cast %19 : vector<8xf32> to vector<8x1xf32>
    %c0_15 = arith.constant 0 : index
    %c0_16 = arith.constant 0 : index
    %21 = vector.load %arg7[%c0_15, %c0_16] : memref<1x1xf32, #tpu.memory_space<vmem>>, vector<1x1xf32>
    %22 = vector.broadcast %21 : vector<1x1xf32> to vector<8x1xf32>
    %23 = arith.addf %20, %22 : vector<8x1xf32>
    %c0_17 = arith.constant 0 : index
    %c0_18 = arith.constant 0 : index
    %24 = vector.load %arg8[%c0_17, %c0_18] : memref<8x1xf32, #tpu.memory_space<vmem>>, vector<8x1xf32>
    tpu.vector_store %arg8[%c0_17, %c0_18], %23 {strides = array<i32>} : memref<8x1xf32, #tpu.memory_space<vmem>>, vector<8x1xf32>,
    return
  }
  func.func @transform_0(%arg0: i32) -> (i32, i32) {
    %c0_i32 = arith.constant 0 : i32
    %c0_i32_0 = arith.constant 0 : i32
    return %arg0, %c0_i32 : i32, i32
  }
  func.func @transform_1(%arg0: i32) -> (i32, i32) {
    %c0_i32 = arith.constant 0 : i32
    %c0_i32_0 = arith.constant 0 : i32
    %c0_i32_1 = arith.constant 0 : i32
    return %c0_i32, %c0_i32_0 : i32, i32
  }
  func.func @transform_2(%arg0: i32) -> (i32, i32) {
    %c0_i32 = arith.constant 0 : i32
    %c0_i32_0 = arith.constant 0 : i32
    %c0_i32_1 = arith.constant 0 : i32
    return %c0_i32, %c0_i32_0 : i32, i32
  }
  func.func @transform_3(%arg0: i32) -> (i32, i32) {
    %c0_i32 = arith.constant 0 : i32
    %c0_i32_0 = arith.constant 0 : i32
    %c0_i32_1 = arith.constant 0 : i32
    return %c0_i32, %c0_i32_0 : i32, i32
  }
  func.func @transform_4(%arg0: i32) -> (i32, i32) {
    %c0_i32 = arith.constant 0 : i32
    %c0_i32_0 = arith.constant 0 : i32
    %c0_i32_1 = arith.constant 0 : i32
    return %c0_i32, %c0_i32_0 : i32, i32
  }
  func.func @transform_5(%arg0: i32) -> (i32, i32) {
    %c0_i32 = arith.constant 0 : i32
    %c0_i32_0 = arith.constant 0 : i32
    %c0_i32_1 = arith.constant 0 : i32
    return %c0_i32, %c0_i32_0 : i32, i32
  }
  func.func @transform_6(%arg0: i32) -> (i32, i32) {
    %c0_i32 = arith.constant 0 : i32
    %c0_i32_0 = arith.constant 0 : i32
    %c0_i32_1 = arith.constant 0 : i32
    return %c0_i32, %c0_i32_0 : i32, i32
  }
  func.func @transform_7(%arg0: i32) -> (i32, i32) {
    %c0_i32 = arith.constant 0 : i32
    %c0_i32_0 = arith.constant 0 : i32
    return %arg0, %c0_i32 : i32, i32
  }
}

</mosaic_0001>

<bundles_post_ra>
// kernel: tpu_custom_call.1
= control target key start
LH: loop header
LB: loop body
LE: loop exit
PB: predicated region body
PF: predicated region fallthrough
CT: control target
= control target key end

     0   :  { %s1062_s0 = inlined_call_operand.hbm [shape: bf16[16,20], index: 0, kind: input, shape index: {}]   ;;  %s1063_s1 = inlined_call_operand.hbm [shape: bf16[20,128], index: 1, kind: input, shape index: {}]   ;;  %s1064_s2 = inlined_call_operand.vmem [shape: f32[1,128], index: 2, kind: input, shape index: {}]   ;;  %s1065_s3 = inlined_call_operand.hbm [shape: bf16[128,128], index: 3, kind: input, shape index: {}]   ;;  %s1066_s4 = inlined_call_operand.vmem [shape: f32[1,128], index: 4, kind: input, shape index: {}]   ;;  %s1067_s5 = inlined_call_operand.vmem [shape: f32[1,128], index: 5, kind: input, shape index: {}]   ;;  %s1068_s6 = inlined_call_operand.<no memory space> [shape: f32[1,1], index: 6, kind: input, shape index: {}]   ;;  %s1069_s7 = inlined_call_operand.vmem [shape: f32[16,1], index: 7, kind: output, shape index: {}]  }
   0x1   :  { %v12_v0 = vstv %s1068_s6 }
   0x2   :  { %13 = vst [vmem:[#allocation2] sm:$0x1] %v12_v0 }
   0x3   :  { %14 = vsyncpa [#allocation4], 0 }
   0x4   :  { %16 = vsyncpa [#allocation4 + $0x1], 0 }
   0x5   :  { %17 = vsyncpa [#allocation6], 0  ;;  %s925_s26 = smov 0   ;;  %s927_s27 = smov 0  }
   0x6   :  { %s929_s28 = smov 0   ;;  %s931_s29 = smov 0  }
   0x7 LB: > { %s944_s6 = sadd.s32 4294967295, %s873_s29   ;;  %p43_p0 = scmp.ne.s32.totalorder %s865_s27, %s861_s26  ;;  %s873_s29 = sphi %s931_s29, %s1085_s29   ;;  %s869_s28 = sphi %s929_s28, %s1084_s28   ;;  %s865_s27 = sphi %s927_s27, %s1083_s27   ;;  %s861_s26 = sphi %s925_s26, %s1082_s26  }
   0x8   : > { %p1070_p1 = scmp.eq.s32.totalorder %s944_s6, 0  ;;  %p613_p2 = scmp.ge.s32.totalorder %s873_s29, 1 }
   0x9   : > { %p206_p3 = scmp.lt.s32.totalorder %s873_s29, 3  ;;  %s875_s9 = smov [#allocation5]  }
   0xa   : > { %p952_p4 = por %p1070_p1, %p43_p0  ;;  %s218_s10 = sshll.u32 %s875_s9, 4  ;;  %s219_s10 = int_to_ptr.vmem [resolvable:$true] %s218_s10 }
   0xb   : > { %p956_p5 = pnand %p613_p2, %p206_p3  ;;  %s876_s12 = smov [#allocation7]  }
   0xc   : > { %s1073_s30 = scalar_select %p952_p4, 1, 0 }
   0xd   : > { %s1074_s8 = scalar_select %p956_p5, 1, 0 }
   0xe   : > { %p691_p6 = pneg %p956_p5  ;;  %s234_s13 = sshll.u32 %s876_s12, 4  ;;  %s235_s13 = int_to_ptr.vmem [resolvable:$true] %s234_s13 }
   0xf   : > { %s766_s14 = scalar_lea.vmem %s219_s10, 192  ;;  %p774_p12 = scmp.lt.s32.totalorder %s219_s10, %s219_s10 }
  0x10   : > { %p964_p7 = pnand %p691_p6, %p1070_p1  ;;  %p767_p9 = scmp.ne.s32.totalorder %s219_s10, %s766_s14 }
  0x11   : > { %p775_p13 = scmp.lt.s32.totalorder %s766_s14, %s766_s14 }
  0x12   : > { %p757_p8 = pneg %p964_p7 }
  0x13   : > { %p776_p0 = por %p775_p13, %p774_p12 }
  0x14   : > { %p769_p10 = pnand %p767_p9, %p757_p8 }
  0x16   : > { %p770_p11 = pneg %p769_p10 }
  0x18   : > { %p777_p2 = pnand %p776_p0, %p770_p11 }
  0x1a   : > { %780 = shalt.err (!%p777_p2)
}
  0x1b   : > { %s877_s15 = smov 64   ;;  %s878_s16 = smov 4  }
  0x1c   : > { %694 = dma.hbm_to_vmem [thread:$0]  (!%p964_p7), %s1063_s1, 192, %s219_s10, [#allocation6], %s877_s15, %s877_s15, %s878_s16  }
  0x1d   : > { %s792_s19 = scalar_lea.vmem %s235_s13, 1024  ;;  %p800_p10 = scmp.lt.s32.totalorder %s235_s13, %s235_s13 }
  0x1e   : > { %p793_p3 = scmp.ne.s32.totalorder %s235_s13, %s792_s19  ;;  %p801_p1 = scmp.lt.s32.totalorder %s792_s19, %s792_s19 }
  0x20   : > { %p795_p6 = pnand %p793_p3, %p757_p8  ;;  %p802_p12 = por %p801_p1, %p800_p10 }
  0x22   : > { %p796_p9 = pneg %p795_p6 }
  0x24   : > { %p803_p11 = pnand %p802_p12, %p796_p9 }
  0x26   : > { %806 = shalt.err (!%p803_p11)
}
  0x27   : > { %697 = dma.hbm_to_vmem [thread:$0]  (!%p964_p7), %s1065_s3, 1024, %s235_s13, [#allocation6], %s877_s15, %s877_s15, %s878_s16  }
  0x28   : > { %s987_s22 = sadd.s32 1, %s873_s29   ;;  %s30_s23 = sadd.s32 1, %s869_s28 }
  0x29   : > { %s27_s24 = ssub.s32 %s873_s29, %s987_s22  ;;  %p37_p1 = scmp.ne.s32.totalorder %s869_s28, %s865_s27 }
  0x2a   : > { %p28_p8 = scmp.eq.s32.totalorder %s27_s24, 0  ;;  %p38_p13 = scmp.eq.s32.totalorder %s873_s29, 0 }
  0x2b   : > { %p704_p0 = scmp.lt.s32.totalorder %s873_s29, 2  ;;  %s257_s25 = sand.u32 1, %s869_s28  }
  0x2c   : > { %s998_s26 = scalar_select %p28_p8, %s869_s28, %s30_s23  }
  0x2d   : > { %p39_p2 = por %p38_p13, %p37_p1  ;;  %s617_s9 = sshll.u32 %s257_s25, 2 }
  0x2e   : > { %s618_s10 = sshll.u32 %s873_s29, 6  ;;  %s261_s13 = scalar_lea.vmem [#allocation3], %s617_s9 }
  0x2f   : > { %s1004_s14 = scalar_lea.hbm %s1062_s0, %s618_s10  ;;  %s268_s15 = sshll.u32 %s261_s13, 4  ;;  %s269_s15 = int_to_ptr.vmem [resolvable:$true] %s268_s15 }
  0x30   : > { %p1006_p7 = pnand %p704_p0, %p39_p2  ;;  %s258_s17 = scalar_lea.sflag [#allocation4], %s257_s25 }
  0x31   : > { %s807_s18 = scalar_lea.hbm %s1004_s14, 64  ;;  %s812_s20 = scalar_lea.hbm %s1062_s0, 128 }
  0x32   : > { %p808_p3 = scmp.ne.s32.totalorder %s1004_s14, %s807_s18  ;;  %p809_p6 = pneg %p1006_p7 }
  0x33   : > { %p813_p12 = scmp.lt.s32.totalorder %s1004_s14, %s1062_s0  ;;  %p814_p11 = scmp.lt.s32.totalorder %s812_s20, %s807_s18 }
  0x34   : > { %p810_p9 = pnand %p809_p6, %p808_p3 }
  0x35   : > { %p815_p1 = por %p814_p11, %p813_p12 }
  0x36   : > { %p811_p10 = pneg %p810_p9 }
  0x38   : > { %p816_p8 = pnand %p815_p1, %p811_p10 }
  0x3a   : > { %819 = shalt.err (!%p816_p8)
}
  0x3b   : > { %s820_s24 = scalar_lea.vmem %s269_s15, 64  ;;  %s879_s25 = smov [#allocation3]  }
  0x3c   : > { %p821_p13 = scmp.ne.s32.totalorder %s269_s15, %s820_s24  ;;  %s825_s9 = sshll.u32 %s879_s25, 4  ;;  %s826_s9 = int_to_ptr.vmem [resolvable:$false] %s825_s9 }
  0x3d   : > { %s827_s10 = scalar_lea.vmem %s826_s9, 128  ;;  %p828_p3 = scmp.lt.s32.totalorder %s269_s15, %s826_s9 }
  0x3e   : > { %p823_p0 = pnand %p821_p13, %p809_p6  ;;  %p829_p9 = scmp.lt.s32.totalorder %s827_s10, %s820_s24 }
  0x40   : > { %p824_p2 = pneg %p823_p0  ;;  %p830_p4 = por %p829_p9, %p828_p3 }
  0x42   : > { %p831_p5 = pnand %p830_p4, %p824_p2 }
  0x44   : > { %834 = shalt.err (!%p831_p5)
}
  0x45   : > { %701 = dma.hbm_to_vmem [thread:$0]  (!%p1006_p7), %s1004_s14, 64, %s269_s15, %s258_s17  }
  0x46   : > { %p1077_p10 = scmp.ne.s32.totalorder %s1074_s8, 0 }
  0x47   : > { %s279_s11 = sand.u32 (!%p1077_p10), 1, %s865_s27   ;;  %p1078_p6 = scmp.ne.s32.totalorder (!%p1077_p10), %s1073_s30, 0 }
  0x48   : > { %277 = sbr.rel (%p1077_p10) target bundleno = 630 (0x276), region = 48  ;;  %s620_s12 = sshll.u32 (!%p1077_p10), %s279_s11, 2 }
  0x49   : > { %s280_s13 = scalar_lea.sflag (!%p1077_p10), [#allocation4], %s279_s11  ;;  %s283_s18 = scalar_lea.vmem (!%p1077_p10), [#allocation3], %s620_s12 }
  0x4d   : > { %852 = dma.done.wait (%p1078_p6), %s280_s13, 64  }
  0x4e   : > { %854 = vsyncadd (%p1078_p6), %s280_s13, 4294967232  ;;  %p1079_p4 = scmp.eq.s32.totalorder %s944_s6, 0 }
  0x50   : > { %856 = dma.done.wait (%p1079_p4), [#allocation6], 1216   ;;  %p1080_p5 = pmov %p1079_p4 }
  0x51   : > { %v880_v1 = vmov 0.0   ;;  %vm881_vm0 = vmmov 0   ;;  %vm350_vm1 = vcmask 1041408   ;;  %v745_v2 = vld [vmem:[#allocation5 + $0x8] ss:$0 sps:$4 sm:$0x33]  }
  0x52   : > { %858 = vsyncadd (%p1080_p5), [#allocation6], 4294966080  ;;  %653 = vmatprep.subr.bf16.mxu0 %v880_v1  ;;  %657 = vmatprep.mubr.msk.bf16.mxu0 %vm881_vm0, %v880_v1  ;;  %v352_v3 = vsel %vm350_vm1, %v745_v2, 0  ;;  %v747_v4 = vld [vmem:[#allocation7 + $0x38] sm:$0xff]   ;;  %v748_v6 = vld [vmem:[#allocation7 + $0x30] sm:$0xff]   ;;  %vm346_vm2 = vcmask 162816  }
  0x53   : > { %661 = vmatprep.subr.bf16.mxu1 %v880_v1  ;;  %677 = vmatprep.mubr.msk.bf16.mxu1 %vm881_vm0, %v880_v1  ;;  %v746_v5 = vld [vmem:[#allocation5] sm:$0xff]   ;;  %v326_v7 = vld [vmem:[%s283_s18] sm:$0xf]  ;;  %v750_v9 = vld [vmem:[#allocation7 + $0x20] sm:$0xff]   ;;  %p321_p7 = scmp.lt.s32.totalorder %s944_s6, 1  ;;  %vm526_vm3 = vcmask 7168  }
  0x54   : > { %654 = vmatpush3.bf16.msra.mxu0 %v352_v3  ;;  %662 = vmatpush3.bf16.msra.mxu1 %v747_v4  ;;  %v749_v8 = vld [vmem:[#allocation7 + $0x28] sm:$0xff]   ;;  %v751_v10 = vld [vmem:[#allocation7 + $0x18] sm:$0xff]   ;;  %v752_v11 = vld [vmem:[#allocation7 + $0x10] sm:$0xff]  }
  0x55   : > { %655 = vmatprep.subr.bf16.mxu0 %v880_v1  ;;  %663 = vmatprep.subr.bf16.mxu1 %v880_v1  ;;  %v753_v12 = vld [vmem:[#allocation7 + $0x8] sm:$0xff]   ;;  %v754_v13 = vld [vmem:[#allocation7] sm:$0xff]   ;;  %s1087_s6 = smov (!%p321_p7, %s944_s6), 1 }
  0x56   : > { %v624_v14 = vld [vmem:[%s1064_s2] ss:$0 sm:$0xff]  ;;  %s623_s29 = sshll.u32 %s1087_s6, 3 }
  0x57   : > { %v628_v22 = vld [vmem:[%s1066_s4] ss:$0 sm:$0xff]  ;;  %s324_s21 = scalar_lea.vmem %s1069_s7, %s623_s29 }
  0x58   : > { %656 = vmatpush3.bf16.msra.mxu0 %v746_v5  ;;  %664 = vmatpush3.bf16.msra.mxu1 %v748_v6  ;;  %v637_v26 = vld [vmem:[%s1067_s5] ss:$0 sm:$0xff] }
  0x59   : > { %665 = vmatprep.subr.bf16.mxu1 %v880_v1  ;;  %v638_v31 = vld [vmem:[#allocation2] ss:$0 sm:$0xff] }
  0x5b   : > { %658 = vmatmul.mubr.msk.bf16.vlgmr.msra.gmra.mxu0 %vm346_vm2, %v326_v7 }
  0x5c   : > { %666 = vmatpush3.bf16.msra.mxu1 %v749_v8 }
  0x5d   : > { %667 = vmatprep.subr.bf16.mxu1 %v880_v1 }
  0x60   : > { %668 = vmatpush3.bf16.msra.mxu1 %v750_v9 }
  0x61   : > { %669 = vmatprep.subr.bf16.mxu1 %v880_v1 }
  0x64   : > { %670 = vmatpush3.bf16.msra.mxu1 %v751_v10 }
  0x65   : > { %671 = vmatprep.subr.bf16.mxu1 %v880_v1 }
  0x68   : > { %672 = vmatpush3.bf16.msra.mxu1 %v752_v11 }
  0x69   : > { %673 = vmatprep.subr.bf16.mxu1 %v880_v1 }
  0x6c   : > { %674 = vmatpush3.bf16.msra.mxu1 %v753_v12 }
  0x6d   : > { %675 = vmatprep.subr.bf16.mxu1 %v880_v1 }
  0x70   : > { %676 = vmatpush3.bf16.msra.mxu1 %v754_v13 }
 0x11b   : > { %v388_v15 = vpop.f32.mrf.mxu0 }
 0x11c   : > { %v389_v16 = vadd.f32 %v624_v14, %v388_v15 }
 0x11d   : > { %v659_v17 = vpop.f32.mrf.mxu0 }
 0x11e   : > { %v394_v18 = vmax.f32 %v389_v16, 0.0 }
 0x11f   : > { %v391_v19 = vpop.f32.mrf.mxu0 }
 0x120   : > { %v395_v20 = vpack.c.bf16 %v394_v18, %v394_v18 }
 0x121   : > { %v660_v21 = vpop.f32.mrf.mxu0 }
 0x122   : > { %678 = vmatmul.mubr.bf16.vlgmr.msra.gmra.mxu1 %v395_v20 }
 0x1e2   : > { %v501_v23 = vpop.f32.mrf.mxu1 }
 0x1e3   : > { %v502_v24 = vadd.f32 %v628_v22, %v501_v23 }
 0x1e4   : > { %v679_v25 = vpop.f32.mrf.mxu1 }
 0x1e5   : > { %v507_v27 = vmax.f32 %v502_v24, 0.0 }
 0x1e6   : > { %v504_v28 = vpop.f32.mrf.mxu1 }
 0x1e7   : > { %v515_v29 = vmul.f32 %v637_v26, %v507_v27 }
 0x1e8   : > { %v680_v30 = vpop.f32.mrf.mxu1 }
 0x1e9   : > { %516 = vadd.xlane.f32.xlu0 %v515_v29 }
 0x272   : > { %v517_v32 = vpop.xlane.xlu0 %516 }
 0x273   : > { %v525_v33 = vadd.f32 %v638_v31, %v517_v32 }
 0x275   : > { %527 = vst.msk [vmem:[%s324_s21] sm:$0xff] %vm526_vm3, %v525_v33 }
 0x276 PF: > { %s1081_s23 = smov %s998_s26  ;;  %p20_p12 = scmp.ge.s32.totalorder %s987_s22, 4  }
 0x277   : > { %s1082_s26 = smov %s865_s27  ;;  %s1083_s27 = smov %s869_s28 }
 0x278   : > { %s1084_s28 = smov %s1081_s23  ;;  %s1085_s29 = smov %s987_s22 }
 0x279   :  { %22 = sbr.rel (!%p20_p12) target bundleno = 7 (0x7), region = 96 }
 0x27e   :  { %547 = vsyncpa [#allocation4], 1 }
 0x27f   :  { %549 = vsyncpa [#allocation4 + $0x1], 1 }
 0x280   :  { %550 = vsyncpa [#allocation6], 1 }

</bundles_post_ra>
